<compile_context>
chip_gen: v7x
topology: tpu7x:2x2x1
jax: 0.10.0
libtpu: 0.0.40
codegen_flags: <defaults>
</compile_context>

<pallas_src>
import functools

import jax
import jax.numpy as jnp
from jax.experimental import pallas as pl
from jax.experimental.pallas import tpu as pltpu


def _round_up(n, m):
    return (n + m - 1) // m * m


def mlp_kernel(x_ref, w1_ref, b1_ref, w2_ref, b2_ref, w3_ref, b3_ref, o_ref):
    # One TB-row tile of the batch; weights/biases are whole (VMEM-resident).
    # All matmuls run on the MXU in f32 with f32 accumulation; bias add + ReLU
    # are cheap VPU work fully hidden under the x/out DMA.
    x = x_ref[...]                                                     # f32 (TB, in)
    h = jnp.dot(x, w1_ref[...], preferred_element_type=jnp.float32)   # f32 (TB, hid)
    h = jnp.maximum(h + b1_ref[...], 0.0)
    h = jnp.dot(h, w2_ref[...], preferred_element_type=jnp.float32)   # f32 (TB, hid)
    h = jnp.maximum(h + b2_ref[...], 0.0)
    out = jnp.dot(h, w3_ref[...], preferred_element_type=jnp.float32) # f32 (TB, out)
    o_ref[...] = (out + b3_ref[...]).astype(o_ref.dtype)              # narrow store


@functools.partial(jax.jit, static_argnames=("block_batch",))
def mlp_forward(x, params, *, block_batch=2048):
    """x: (batch, in_dim) f32.  params: (w1,b1,w2,b2,w3,b3), weights (in,out)."""
    w1, b1, w2, b2, w3, b3 = params
    batch, in_dim = x.shape
    hid = w1.shape[1]
    out_dim = w3.shape[1]

    # --- batch tiling ------------------------------------------------------
    # Pick the number of grid steps first, then a tile that minimizes padding.
    # Prefer >= 2 steps when there's enough work so the "parallel" batch axis
    # can split across v7x's dual TensorCores (no-op on v5e/v6e).
    min_rows = 8  # f32 sublane height
    n_steps = max(pl.cdiv(batch, block_batch), 1)
    if n_steps == 1 and batch >= 2 * min_rows:
        n_steps = 2
    tb = _round_up(pl.cdiv(batch, n_steps), min_rows)
    batch_pad = n_steps * tb

    # Pad the batch only if the tiling requires it (fused by XLA; no explicit
    # zeros().at[].set / dtype-cast pre-pass over x).
    xp = x if batch_pad == batch else jnp.pad(x, ((0, batch_pad - batch), (0, 0)))

    grid = (n_steps,)
    const = lambda i: (0, 0)  # weights/biases resident across the whole grid

    flops = 2 * batch_pad * (in_dim * hid + hid * hid + hid * out_dim)
    bytes_accessed = (
        batch_pad * in_dim * 4                    # x read
        + (w1.size + w2.size + w3.size) * 4       # weights
        + (b1.size + b2.size + b3.size) * 4       # biases
        + batch_pad * out_dim * 4                 # narrow output write
    )

    out = pl.pallas_call(
        mlp_kernel,
        out_shape=jax.ShapeDtypeStruct((batch_pad, out_dim), jnp.float32),
        grid_spec=pltpu.PrefetchScalarGridSpec(
            num_scalar_prefetch=0,
            grid=grid,
            in_specs=[
                pl.BlockSpec((tb, in_dim), lambda i: (i, 0)),   # streamed x tile
                pl.BlockSpec((in_dim, hid), const),             # W1 resident
                pl.BlockSpec((1, hid), const),                  # b1 resident
                pl.BlockSpec((hid, hid), const),                # W2 resident
                pl.BlockSpec((1, hid), const),                  # b2 resident
                pl.BlockSpec((hid, out_dim), const),            # W3 resident
                pl.BlockSpec((1, out_dim), const),              # b3 resident
            ],
            out_specs=pl.BlockSpec((tb, out_dim), lambda i: (i, 0)),  # narrow out
        ),
        compiler_params=pltpu.CompilerParams(
            dimension_semantics=("parallel",),
        ),
        cost_estimate=pl.CostEstimate(
            flops=flops, transcendentals=0, bytes_accessed=bytes_accessed),
    )(xp, w1, b1, w2, b2, w3, b3)

    # Strip batch padding (if any); output columns are already exact.
    return out if batch_pad == batch else out[:batch]


def init_params(key, in_dim=10, hidden_dim=30, out_dim=2):
    """Deterministic init mirroring PyTorch nn.Linear default U(-1/sqrt(fan_in), +)."""
    def linear_init(k, fan_in, fan_out):
        kw, kb = jax.random.split(k)
        bound = 1.0 / jnp.sqrt(fan_in)
        # Stored as (in_features, out_features): already transposed vs PyTorch.
        w = jax.random.uniform(kw, (fan_in, fan_out), jnp.float32, -bound, bound)
        b = jax.random.uniform(kb, (1, fan_out), jnp.float32, -bound, bound)
        return w, b

    k1, k2, k3 = jax.random.split(key, 3)
    w1, b1 = linear_init(k1, in_dim, hidden_dim)
    w2, b2 = linear_init(k2, hidden_dim, hidden_dim)
    w3, b3 = linear_init(k3, hidden_dim, out_dim)
    return (w1, b1, w2, b2, w3, b3)


def mlp_reference_f32(x, params):
    w1, b1, w2, b2, w3, b3 = params
    h = jnp.maximum(x @ w1 + b1, 0.0)
    h = jnp.maximum(h @ w2 + b2, 0.0)
    return h @ w3 + b3


if __name__ == "__main__":
    key = jax.random.PRNGKey(0)
    kx, kx2, kp = jax.random.split(key, 3)

    in_dim, hidden_dim, out_dim = 10, 30, 2
    params = init_params(kp, in_dim, hidden_dim, out_dim)

    # Case 1: tiny batch (single grid step, no padding).
    x = jax.random.normal(kx, (8, in_dim), jnp.float32)
    out = jax.block_until_ready(mlp_forward(x, params))
    assert out.shape == (8, out_dim)
    assert jnp.allclose(out, mlp_reference_f32(x, params), atol=1e-4, rtol=1e-4), \
        "mismatch vs f32 reference (batch=8)"

    # Case 2: awkward batch (exercises tail padding + multi-step parallel grid).
    x2 = jax.random.normal(kx2, (37, in_dim), jnp.float32)
    out2 = jax.block_until_ready(mlp_forward(x2, params))
    assert out2.shape == (37, out_dim)
    assert jnp.allclose(out2, mlp_reference_f32(x2, params), atol=1e-4, rtol=1e-4), \
        "mismatch vs f32 reference (batch=37)"

    print("KERNEL_OK")
</pallas_src>

<mosaic_0001>
module attributes {stable_mosaic.version = 11 : i64} {
  func.func @mlp_kernel(%arg0: i32, %arg1: memref<8x10xf32, #tpu.memory_space<vmem>>, %arg2: memref<10x30xf32, #tpu.memory_space<vmem>>, %arg3: memref<1x30xf32, #tpu.memory_space<vmem>>, %arg4: memref<30x30xf32, #tpu.memory_space<vmem>>, %arg5: memref<1x30xf32, #tpu.memory_space<vmem>>, %arg6: memref<30x2xf32, #tpu.memory_space<vmem>>, %arg7: memref<1x2xf32, #tpu.memory_space<vmem>>, %arg8: memref<8x2xf32, #tpu.memory_space<vmem>>) attributes {dimension_semantics = [#tpu.dimension_semantics<parallel>], iteration_bounds = array<i64: 1>, scalar_prefetch = 0 : i64, scratch_operands = 0 : i64, tpu.core_type = #tpu.core_type<tc>, window_params = [{transform_indices = @transform_0, window_bounds = array<i64: 8, 10>}, {pipeline_mode = #tpu.pipeline_mode<synchronous>, transform_indices = @transform_1, window_bounds = array<i64: 10, 30>}, {pipeline_mode = #tpu.pipeline_mode<synchronous>, transform_indices = @transform_2, window_bounds = array<i64: 1, 30>}, {pipeline_mode = #tpu.pipeline_mode<synchronous>, transform_indices = @transform_3, window_bounds = array<i64: 30, 30>}, {pipeline_mode = #tpu.pipeline_mode<synchronous>, transform_indices = @transform_4, window_bounds = array<i64: 1, 30>}, {pipeline_mode = #tpu.pipeline_mode<synchronous>, transform_indices = @transform_5, window_bounds = array<i64: 30, 2>}, {pipeline_mode = #tpu.pipeline_mode<synchronous>, transform_indices = @transform_6, window_bounds = array<i64: 1, 2>}, {transform_indices = @transform_7, window_bounds = array<i64: 8, 2>}]} {
    %c0 = arith.constant 0 : index
    %c0_0 = arith.constant 0 : index
    %0 = vector.load %arg1[%c0, %c0_0] : memref<8x10xf32, #tpu.memory_space<vmem>>, vector<8x10xf32>
    %c0_1 = arith.constant 0 : index
    %c0_2 = arith.constant 0 : index
    %1 = vector.load %arg2[%c0_1, %c0_2] : memref<10x30xf32, #tpu.memory_space<vmem>>, vector<10x30xf32>
    %cst = arith.constant dense<0.000000e+00> : vector<8x30xf32>
    %2 = tpu.matmul %0, %1, %cst {dimension_numbers = #tpu.dot_dimension_numbers<[1], [0], [0], [1], [0, 0, 1, 1], [], []>} : vector<8x10xf32>, vector<10x30xf32>, vector<8x30xf32> -> vector<8x30xf32>
    %c0_3 = arith.constant 0 : index
    %c0_4 = arith.constant 0 : index
    %3 = vector.load %arg3[%c0_3, %c0_4] : memref<1x30xf32, #tpu.memory_space<vmem>>, vector<1x30xf32>
    %4 = vector.broadcast %3 : vector<1x30xf32> to vector<8x30xf32>
    %5 = arith.addf %2, %4 : vector<8x30xf32>
    %cst_5 = arith.constant 0.000000e+00 : f32
    %6 = vector.broadcast %cst_5 : f32 to vector<8x30xf32>
    %7 = arith.maximumf %5, %6 : vector<8x30xf32>
    %c0_6 = arith.constant 0 : index
    %c0_7 = arith.constant 0 : index
    %8 = vector.load %arg4[%c0_6, %c0_7] : memref<30x30xf32, #tpu.memory_space<vmem>>, vector<30x30xf32>
    %cst_8 = arith.constant dense<0.000000e+00> : vector<8x30xf32>
    %9 = tpu.matmul %7, %8, %cst_8 {dimension_numbers = #tpu.dot_dimension_numbers<[1], [0], [0], [1], [0, 0, 1, 1], [], []>} : vector<8x30xf32>, vector<30x30xf32>, vector<8x30xf32> -> vector<8x30xf32>
    %c0_9 = arith.constant 0 : index
    %c0_10 = arith.constant 0 : index
    %10 = vector.load %arg5[%c0_9, %c0_10] : memref<1x30xf32, #tpu.memory_space<vmem>>, vector<1x30xf32>
    %11 = vector.broadcast %10 : vector<1x30xf32> to vector<8x30xf32>
    %12 = arith.addf %9, %11 : vector<8x30xf32>
    %cst_11 = arith.constant 0.000000e+00 : f32
    %13 = vector.broadcast %cst_11 : f32 to vector<8x30xf32>
    %14 = arith.maximumf %12, %13 : vector<8x30xf32>
    %c0_12 = arith.constant 0 : index
    %c0_13 = arith.constant 0 : index
    %15 = vector.load %arg6[%c0_12, %c0_13] : memref<30x2xf32, #tpu.memory_space<vmem>>, vector<30x2xf32>
    %cst_14 = arith.constant dense<0.000000e+00> : vector<8x2xf32>
    %16 = tpu.matmul %14, %15, %cst_14 {dimension_numbers = #tpu.dot_dimension_numbers<[1], [0], [0], [1], [0, 0, 1, 1], [], []>} : vector<8x30xf32>, vector<30x2xf32>, vector<8x2xf32> -> vector<8x2xf32>
    %c0_15 = arith.constant 0 : index
    %c0_16 = arith.constant 0 : index
    %17 = vector.load %arg7[%c0_15, %c0_16] : memref<1x2xf32, #tpu.memory_space<vmem>>, vector<1x2xf32>
    %18 = vector.broadcast %17 : vector<1x2xf32> to vector<8x2xf32>
    %19 = arith.addf %16, %18 : vector<8x2xf32>
    %c0_17 = arith.constant 0 : index
    %c0_18 = arith.constant 0 : index
    %20 = vector.load %arg8[%c0_17, %c0_18] : memref<8x2xf32, #tpu.memory_space<vmem>>, vector<8x2xf32>
    tpu.vector_store %arg8[%c0_17, %c0_18], %19 {strides = array<i32>} : memref<8x2xf32, #tpu.memory_space<vmem>>, vector<8x2xf32>,
    return
  }
  func.func @transform_0(%arg0: i32) -> (i32, i32) {
    %c0_i32 = arith.constant 0 : i32
    %c0_i32_0 = arith.constant 0 : i32
    return %arg0, %c0_i32 : i32, i32
  }
  func.func @transform_1(%arg0: i32) -> (i32, i32) {
    %c0_i32 = arith.constant 0 : i32
    %c0_i32_0 = arith.constant 0 : i32
    %c0_i32_1 = arith.constant 0 : i32
    return %c0_i32, %c0_i32_0 : i32, i32
  }
  func.func @transform_2(%arg0: i32) -> (i32, i32) {
    %c0_i32 = arith.constant 0 : i32
    %c0_i32_0 = arith.constant 0 : i32
    %c0_i32_1 = arith.constant 0 : i32
    return %c0_i32, %c0_i32_0 : i32, i32
  }
  func.func @transform_3(%arg0: i32) -> (i32, i32) {
    %c0_i32 = arith.constant 0 : i32
    %c0_i32_0 = arith.constant 0 : i32
    %c0_i32_1 = arith.constant 0 : i32
    return %c0_i32, %c0_i32_0 : i32, i32
  }
  func.func @transform_4(%arg0: i32) -> (i32, i32) {
    %c0_i32 = arith.constant 0 : i32
    %c0_i32_0 = arith.constant 0 : i32
    %c0_i32_1 = arith.constant 0 : i32
    return %c0_i32, %c0_i32_0 : i32, i32
  }
  func.func @transform_5(%arg0: i32) -> (i32, i32) {
    %c0_i32 = arith.constant 0 : i32
    %c0_i32_0 = arith.constant 0 : i32
    %c0_i32_1 = arith.constant 0 : i32
    return %c0_i32, %c0_i32_0 : i32, i32
  }
  func.func @transform_6(%arg0: i32) -> (i32, i32) {
    %c0_i32 = arith.constant 0 : i32
    %c0_i32_0 = arith.constant 0 : i32
    %c0_i32_1 = arith.constant 0 : i32
    return %c0_i32, %c0_i32_0 : i32, i32
  }
  func.func @transform_7(%arg0: i32) -> (i32, i32) {
    %c0_i32 = arith.constant 0 : i32
    %c0_i32_0 = arith.constant 0 : i32
    return %arg0, %c0_i32 : i32, i32
  }
}

</mosaic_0001>

<bundles_post_ra>
// kernel: mlp_forward.1
= control target key start
LH: loop header
LB: loop body
LE: loop exit
PB: predicated region body
PF: predicated region fallthrough
CT: control target
= control target key end

     0   :  { %12 = vsyncpa [#allocation3], 0  ;;  %s413_s24 = smov [#allocation2]   ;;  %s524_s0 = inlined_call_operand.vmem [shape: f32[8,10], index: 0, kind: input, shape index: {}]   ;;  %s525_s1 = inlined_call_operand.hbm [shape: f32[10,30], index: 1, kind: input, shape index: {}]   ;;  %s526_s2 = inlined_call_operand.vmem [shape: f32[1,30], index: 2, kind: input, shape index: {}]   ;;  %s527_s3 = inlined_call_operand.vmem [shape: f32[30,30], index: 3, kind: input, shape index: {}]   ;;  %s528_s4 = inlined_call_operand.vmem [shape: f32[1,30], index: 4, kind: input, shape index: {}]   ;;  %s529_s5 = inlined_call_operand.vmem [shape: f32[30,2], index: 5, kind: input, shape index: {}]   ;;  %s530_s6 = inlined_call_operand.vmem [shape: f32[1,2], index: 6, kind: input, shape index: {}]   ;;  %s531_s7 = inlined_call_operand.vmem [shape: f32[8,2], index: 7, kind: output, shape index: {}]  }
   0x1   :  { %s20_s25 = sshll.u32 %s413_s24, 4  ;;  %s389_s28 = scalar_lea.hbm %s525_s1, 256  ;;  %s21_s25 = int_to_ptr.vmem [resolvable:$true] %s20_s25 }
   0x2   :  { %p390_p0 = scmp.ne.s32.totalorder %s525_s1, %s389_s28  ;;  %p393_p1 = scmp.lt.u32.totalorder %s389_s28, %s525_s1 }
   0x4   :  { %p395_p2 = pnand %p393_p1, %p390_p0 }
   0x6   :  { %398 = shalt.err (!%p395_p2)
}
   0x7   :  { %s399_s10 = scalar_lea.vmem %s21_s25, 256  ;;  %p404_p4 = scmp.lt.s32.totalorder %s21_s25, %s21_s25 }
   0x8   :  { %p400_p3 = scmp.ne.s32.totalorder %s21_s25, %s399_s10  ;;  %p405_p5 = scmp.lt.s32.totalorder %s399_s10, %s399_s10 }
   0xa   :  { %p406_p6 = por %p405_p5, %p404_p4 }
   0xc   :  { %p407_p7 = pnand %p406_p6, %p400_p3 }
   0xe   :  { %410 = shalt.err (!%p407_p7)
}
   0xf   :  { %s414_s11 = smov 128   ;;  %s415_s12 = smov 8  }
  0x10   :  { %26 = dma.hbm_to_vmem [thread:$0]  %s525_s1, 256, %s21_s25, [#allocation3], %s414_s11, %s414_s11, %s415_s12  }
  0x11   :  { %411 = dma.done.wait [#allocation3], 256  }
  0x12   :  { %412 = vsyncadd [#allocation3], 4294967040  ;;  %v416_v0 = vmov 0.0|0.0   ;;  %vm417_vm0 = vmmov 0   ;;  %v418_v1 = vmov 0.0   ;;  %vm54_vm1 = vcmask 1041408  }
  0x13   :  { %364 = vmatprep.subr.bf16.mxu0 %v416_v0  ;;  %368 = vmatprep.subr.bf16.mxu1 %v416_v0  ;;  %v41_v2 = vld [vmem:[#allocation2] sm:$0xff]  ;;  %v42_v3 = vld [vmem:[#allocation2 + $0x8] sm:$0x3]  ;;  %vm419_vm2 = vmmov 1   ;;  %vm50_vm4 = vcmask 80896   ;;  %v131_v9 = vld [vmem:[%s527_s3 + $0x10] sm:$0xff] }
  0x14   :  { %339 = vmatprep.mubr.msk.f32.mxu0 %vm417_vm0, %v418_v1  ;;  %350 = vmatprep.mubr.msk.f32.mxu1 %vm417_vm0, %v418_v1  ;;  %vm366_vm3 = vmpackc.low %vm54_vm1, %vm419_vm2  ;;  %v365_v4 = vpack.c.bf16 %v42_v3, %v41_v2  ;;  %v129_v5 = vld [vmem:[%s527_s3] sm:$0xff]  ;;  %v130_v6 = vld [vmem:[%s527_s3 + $0x8] sm:$0xff]  ;;  %vm144_vm5 = vcmask 1045504   ;;  %vm140_vm7 = vcmask 244736   ;;  %vm306_vm8 = vcmask 15360  }
  0x15   :  { %v369_v7 = vpack.c.bf16 %v130_v6, %v129_v5  ;;  %v40_v8 = vld [vmem:[%s524_s0] sm:$0xff]  ;;  %v132_v10 = vld [vmem:[%s527_s3 + $0x18] sm:$0x3f]  ;;  %vm492_vm6 = vmpackc.low %vm144_vm5, %vm419_vm2 }
  0x16   :  { %367 = vmatpush3.bf16.msk.msra.mxu0 %vm366_vm3, %v365_v4  ;;  %v372_v11 = vpack.c.bf16 %v132_v10, %v131_v9  ;;  %v219_v13 = vld [vmem:[%s529_s5] sm:$0xff]  ;;  %v220_v14 = vld [vmem:[%s529_s5 + $0x8] sm:$0xff]  ;;  %v221_v21 = vld [vmem:[%s529_s5 + $0x10] sm:$0xff] }
  0x17   :  { %370 = vmatpush3.bf16.msra.mxu1 %v369_v7  ;;  %375 = vmatprep.subr.bf16.mxu0 %v416_v0  ;;  %v376_v15 = vpack.c.bf16 %v220_v14, %v219_v13  ;;  %v313_v16 = vld [vmem:[%s526_s2] ss:$0 sm:$0xff]  ;;  %v222_v22 = vld [vmem:[%s529_s5 + $0x18] sm:$0x3f] }
  0x18   :  { %371 = vmatprep.subr.bf16.mxu1 %v416_v0  ;;  %v379_v23 = vpack.c.bf16 %v222_v22, %v221_v21  ;;  %v316_v24 = vld [vmem:[%s528_s4] ss:$0 sm:$0xff] }
  0x19   :  { %340 = vmatmul.mubr.msk.f32.vlgmr.msra.gmra.mrb[0].mxu0 %vm50_vm4, %v40_v8  ;;  %v319_v29 = vld [vmem:[%s530_s6] ss:$0 sm:$0xff] }
  0x1a   :  { %361 = vmatprep.mubr.msk.f32.mxu0 %vm417_vm0, %v418_v1  ;;  %377 = vmatpush3.bf16.msra.mxu0 %v376_v15 }
  0x1b   :  { %374 = vmatpush3.bf16.msk.msra.mxu1 %vm492_vm6, %v372_v11  ;;  %378 = vmatprep.subr.bf16.mxu0 %v416_v0 }
  0x1e   :  { %381 = vmatpush3.bf16.msk.msra.mxu0 %vm492_vm6, %v379_v23 }
  0xec   :  { %v124_v17 = vpop.f32.mrb[0].mxu0 }
  0xed   :  { %v125_v18 = vadd.f32 %v313_v16, %v124_v17  ;;  %v341_v19 = vpop.f32.mrb[1].mxu0 }
  0xef   :  { %v128_v20 = vmax.f32 %v125_v18, 0.0 }
  0xf1   :  { %351 = vmatmul.mubr.msk.f32.vlgmr.msra.gmra.mrb[0].mxu1 %vm140_vm7, %v128_v20 }
 0x1c4   :  { %v214_v25 = vpop.f32.mrb[0].mxu1 }
 0x1c5   :  { %v215_v26 = vadd.f32 %v316_v24, %v214_v25  ;;  %v352_v27 = vpop.f32.mrb[1].mxu1 }
 0x1c7   :  { %v218_v28 = vmax.f32 %v215_v26, 0.0 }
 0x1c9   :  { %362 = vmatmul.mubr.msk.f32.vlgmr.msra.gmra.mrb[2].mxu0 %vm140_vm7, %v218_v28 }
 0x29c   :  { %v302_v30 = vpop.f32.mrb[2].mxu0 }
 0x29d   :  { %v303_v31 = vadd.f32 %v319_v29, %v302_v30  ;;  %v363_v32 = vpop.f32.mrb[3].mxu0 }
 0x29f   :  { %307 = vst.msk [vmem:[%s531_s7] sm:$0xff] %vm306_vm8, %v303_v31 }
 0x2a0   :  { %312 = vsyncpa [#allocation3], 1 }

</bundles_post_ra>
